<compile_context>
chip_gen: v7x
topology: tpu7x:2x2x1
jax: 0.10.0
libtpu: 0.0.40
codegen_flags: <defaults>
</compile_context>

<pallas_src>
import jax
import jax.numpy as jnp
from jax.experimental import pallas as pl
from jax.experimental.pallas import tpu as pltpu

LN_EPS = 1e-5


# ------------------------------ small helpers -------------------------------
def _round_up(a, m):
    return (a + m - 1) // m * m


def _sublane_multiple(dtype):
    # min second-minor tile: 8 rows for 32-bit, 16 for 16-bit, 32 for 8-bit
    return max(8, 32 // jnp.dtype(dtype).itemsize)


def _apply_tile_policy():
    """(target_tile_bytes, vmem_limit_bytes) per TPU generation."""
    try:
        vmem_cap = pltpu.get_tpu_info().vmem_capacity_bytes
    except Exception:
        vmem_cap = 64 << 20                      # conservative fallback (v7x-like)
    if vmem_cap >= (100 << 20):                  # v5e / v6e: 128 MiB physical VMEM
        return 8 << 20, 64 << 20
    return 4 << 20, 32 << 20                     # v7x: 64 MiB per TensorCore


def _pick_apply_rows(total_rows, lane_bytes, sub, target_tile_bytes, min_steps=4):
    """Row tile for the apply kernel: bounded by the byte target (no hard cap),
    rounded to the dtype sublane multiple, and kept small enough to give the
    grid >= min_steps steps when there is enough work."""
    rows = (target_tile_bytes // max(1, lane_bytes)) // sub * sub
    rows = max(sub, rows)
    if total_rows >= min_steps * sub:
        rows = min(rows, _round_up(-(-total_rows // min_steps), sub))
    if rows >= total_rows:
        rows = total_rows                        # single full-extent block
    return rows


def _layernorm(h, w, b):
    mu = jnp.mean(h, axis=-1, keepdims=True)
    var = jnp.mean(jnp.square(h - mu), axis=-1, keepdims=True)
    return (h - mu) * jax.lax.rsqrt(var + LN_EPS) * w + b


# --------------------------- kernel 1: FiLM params ---------------------------
def film_params_kernel(z_ref, t_ref, zw1, zw2, zvec, tw1, tw2, tvec,
                       fw_gz, fw_bz, fw_gt, fw_bt, fb_g, fb_b,
                       gamma_ref, beta_ref):
    def branch(x, w1, w2, vec_ref):
        vec = vec_ref[...]                                     # (8, hidden) packed
        h = jnp.dot(x, w1[...], preferred_element_type=jnp.float32) + vec[0:1, :]
        h = jnp.maximum(h, 0.0)                                # ReLU
        h = _layernorm(h, vec[1:2, :], vec[2:3, :])            # LayerNorm(hidden)
        h = jnp.dot(h, w2[...], preferred_element_type=jnp.float32) + vec[3:4, :]
        return _layernorm(h, vec[4:5, :], vec[5:6, :])         # LayerNorm(hidden)

    z_h = branch(z_ref[...], zw1, zw2, zvec)
    t_h = branch(t_ref[...], tw1, tw2, tvec)

    # film_proj split by input half (z/t) and by output columns (gamma/beta):
    # no lane concat, no in-kernel lane slice; "+1" folded into gamma here.
    gamma_ref[...] = 1.0 + (
        jnp.dot(z_h, fw_gz[...], preferred_element_type=jnp.float32)
        + jnp.dot(t_h, fw_gt[...], preferred_element_type=jnp.float32)
        + fb_g[...])
    beta_ref[...] = (
        jnp.dot(z_h, fw_bz[...], preferred_element_type=jnp.float32)
        + jnp.dot(t_h, fw_bt[...], preferred_element_type=jnp.float32)
        + fb_b[...])


# --------------------------- kernel 2: FiLM apply ----------------------------
def _make_film_apply_kernel(rows, sub, fold, resident):
    """out = gamma_p1 * x + beta over lane-dense (rows, lanes) blocks.

    resident: gamma/beta are a single resident (n_blocks*rows, k) block; slice
              the current rows with pl.ds(program_id*rows).
    fold    : k channels folded per row; expand (rows,k) gamma/beta to
              (rows, k*HW) with a 0/1 expansion matmul (MXU is idle here).
    """
    def read_gb(gamma_ref, beta_ref):
        if resident:
            start = pl.multiple_of(pl.program_id(0) * rows, sub)
            return (gamma_ref[pl.ds(start, rows), :],
                    beta_ref[pl.ds(start, rows), :])
        return gamma_ref[...], beta_ref[...]

    if fold:
        def kernel(gamma_ref, beta_ref, exp_ref, x_ref, o_ref):
            g, b = read_gb(gamma_ref, beta_ref)
            e = exp_ref[...]
            g = jnp.dot(g, e, preferred_element_type=jnp.float32)
            b = jnp.dot(b, e, preferred_element_type=jnp.float32)
            x = x_ref[...].astype(jnp.float32)
            o_ref[...] = (g * x + b).astype(o_ref.dtype)
    else:
        def kernel(gamma_ref, beta_ref, x_ref, o_ref):
            g, b = read_gb(gamma_ref, beta_ref)
            x = x_ref[...].astype(jnp.float32)
            o_ref[...] = (g * x + b).astype(o_ref.dtype)
    return kernel


# ------------------------------- parameters ---------------------------------
def init_film_params(key, channels, latent_dim, time_emb_dim, hidden_dim):
    """Deterministic parameter init (shapes match the PyTorch module)."""
    def linear(key, fan_in, fan_out):
        kw, kb = jax.random.split(key)
        bound = 1.0 / jnp.sqrt(fan_in)
        w = jax.random.uniform(kw, (fan_in, fan_out), jnp.float32, -bound, bound)
        b = jax.random.uniform(kb, (1, fan_out), jnp.float32, -bound, bound)
        return w, b

    keys = jax.random.split(key, 4)
    p = {}
    # z_embed branch
    p["zw1"], p["zb1"] = linear(keys[0], latent_dim, hidden_dim)
    p["zg1"], p["zbe1"] = jnp.ones((1, hidden_dim)), jnp.zeros((1, hidden_dim))
    p["zw2"], p["zb2"] = linear(keys[1], hidden_dim, hidden_dim)
    p["zg2"], p["zbe2"] = jnp.ones((1, hidden_dim)), jnp.zeros((1, hidden_dim))
    # t_embed branch
    p["tw1"], p["tb1"] = linear(keys[2], time_emb_dim, hidden_dim)
    p["tg1"], p["tbe1"] = jnp.ones((1, hidden_dim)), jnp.zeros((1, hidden_dim))
    p["tw2"], p["tb2"] = linear(keys[3], hidden_dim, hidden_dim)
    p["tg2"], p["tbe2"] = jnp.ones((1, hidden_dim)), jnp.zeros((1, hidden_dim))
    # film_proj: zero-initialized exactly as in the PyTorch __init__
    p["fw"] = jnp.zeros((2 * hidden_dim, 2 * channels), jnp.float32)
    p["fb"] = jnp.zeros((1, 2 * channels), jnp.float32)
    return p


# -------------------------------- wrapper ------------------------------------
def film_block(x, z, t_emb, params, *, in_place=False):
    B, C, H, W = x.shape
    hidden = params["zw1"].shape[1]
    latent = params["zw1"].shape[0]
    t_dim = params["tw1"].shape[0]

    # ---------------- kernel 1: conditioning MLPs -> (1+gamma), beta --------
    def pack(prefix):   # 6 tiny (1,hidden) vectors -> one (8,hidden) tile
        rows = [params[prefix + n] for n in ("b1", "g1", "be1", "b2", "g2", "be2")]
        pad = jnp.zeros_like(rows[0])
        return jnp.concatenate(rows + [pad, pad], axis=0)

    zvec, tvec = pack("z"), pack("t")
    fw, fb = params["fw"], params["fb"]
    fw_gz, fw_bz = fw[:hidden, :C], fw[:hidden, C:]
    fw_gt, fw_bt = fw[hidden:, :C], fw[hidden:, C:]
    fb_g, fb_b = fb[:, :C], fb[:, C:]

    vmem = pl.BlockSpec(memory_space=pltpu.MemorySpace.VMEM)
    k1_args = (z, t_emb, params["zw1"], params["zw2"], zvec,
               params["tw1"], params["tw2"], tvec,
               fw_gz, fw_bz, fw_gt, fw_bt, fb_g, fb_b)

    flops1 = int(2 * B * (latent + t_dim) * hidden
                 + 4 * B * hidden * hidden + 8 * B * hidden * C)
    bytes1 = int(4 * sum(int(a.size) for a in k1_args) + 4 * 2 * B * C)

    gamma_p1, beta = pl.pallas_call(
        film_params_kernel,
        out_shape=(jax.ShapeDtypeStruct((B, C), jnp.float32),
                   jax.ShapeDtypeStruct((B, C), jnp.float32)),
        in_specs=[vmem] * len(k1_args),
        out_specs=(vmem, vmem),
        cost_estimate=pl.CostEstimate(flops=flops1, transcendentals=4 * B,
                                      bytes_accessed=bytes1),
    )(*k1_args)

    # ---------------- kernel 2: tiled, pipelined FiLM modulation ------------
    BC, HW = B * C, H * W
    itemsize = int(jnp.dtype(x.dtype).itemsize)
    sub = _sublane_multiple(x.dtype)

    # Fold k channels per row when HW < 128 so the output lane dim stays >=128
    # (unmasked stores); correctness only needs BC % k == 0.
    k = 1
    if HW < 128:
        k_try = min(-(-128 // HW), BC)
        if k_try > 1 and BC % k_try == 0:
            k = k_try
    fold = k > 1

    rows_total = BC // k
    lanes = k * HW

    target_tile_bytes, vmem_limit = _apply_tile_policy()
    rows = _pick_apply_rows(rows_total, lanes * itemsize, sub, target_tile_bytes)
    n_blocks = pl.cdiv(rows_total, rows)

    x_flat = x.reshape(rows_total, lanes)
    gamma_col = gamma_p1.reshape(rows_total, k)   # row order matches x_flat rows
    beta_col = beta.reshape(rows_total, k)
    gb_rows = n_blocks * rows                     # pad so every block / slice is in-bounds
    if gb_rows > rows_total:
        pad = ((0, gb_rows - rows_total), (0, 0))
        gamma_col = jnp.pad(gamma_col, pad)
        beta_col = jnp.pad(beta_col, pad)

    # gamma/beta: resident once (constant index_map, sliced with pl.ds in-kernel)
    # if their lane-padded footprint is small; otherwise tiled per block like x.
    resident = (n_blocks > 1) and (gb_rows * 128 * 4 * 2 <= (4 << 20))
    if resident:
        gb_spec = pl.BlockSpec((gb_rows, k), lambda i: (0, 0))
    else:
        gb_spec = pl.BlockSpec((rows, k), lambda i: (i, 0))

    in_specs = [gb_spec, gb_spec]
    args = [gamma_col, beta_col]
    if fold:
        expand = jnp.kron(jnp.eye(k, dtype=jnp.float32),
                          jnp.ones((1, HW), jnp.float32))      # (k, k*HW) 0/1
        in_specs.append(pl.BlockSpec((k, lanes), lambda i: (0, 0)))
        args.append(expand)
    x_index = len(args)
    in_specs.append(pl.BlockSpec((rows, lanes), lambda i: (i, 0)))
    args.append(x_flat)

    out_flat = pl.pallas_call(
        _make_film_apply_kernel(rows, sub, fold, resident),
        out_shape=jax.ShapeDtypeStruct((rows_total, lanes), x.dtype),
        grid=(n_blocks,),
        in_specs=in_specs,
        out_specs=pl.BlockSpec((rows, lanes), lambda i: (i, 0)),
        compiler_params=pltpu.CompilerParams(
            dimension_semantics=("parallel",),     # shard row tiles across TCs
            vmem_limit_bytes=vmem_limit),
        cost_estimate=pl.CostEstimate(
            flops=2 * rows_total * lanes, transcendentals=0,
            bytes_accessed=2 * rows_total * lanes * itemsize + 8 * gb_rows * k),
        input_output_aliases=({x_index: 0} if in_place else {}),
    )(*args)

    return out_flat.reshape(B, C, H, W)


# ---------------- pure-JAX reference (for correctness check) ----------------
def film_block_ref(x, z, t_emb, p):
    def ln(h, w, b):
        mu = h.mean(-1, keepdims=True)
        var = ((h - mu) ** 2).mean(-1, keepdims=True)
        return (h - mu) / jnp.sqrt(var + LN_EPS) * w + b

    def branch(v, w1, b1, g1, be1, w2, b2, g2, be2):
        h = jnp.maximum(v @ w1 + b1, 0.0)
        h = ln(h, g1, be1)
        h = h @ w2 + b2
        return ln(h, g2, be2)

    z_h = branch(z, p["zw1"], p["zb1"], p["zg1"], p["zbe1"],
                 p["zw2"], p["zb2"], p["zg2"], p["zbe2"])
    t_h = branch(t_emb, p["tw1"], p["tb1"], p["tg1"], p["tbe1"],
                 p["tw2"], p["tb2"], p["tg2"], p["tbe2"])
    cond = jnp.concatenate([z_h, t_h], axis=1)
    film = cond @ p["fw"] + p["fb"]
    C = x.shape[1]
    gamma = (1.0 + film[:, :C])[:, :, None, None]
    beta = film[:, C:][:, :, None, None]
    return gamma * x + beta


if __name__ == "__main__":
    B, C, H, W = 2, 4, 16, 16
    latent_dim, time_emb_dim, hidden_dim = 8, 8, 32

    key = jax.random.PRNGKey(0)
    kx, kz, kt, kp, kf1, kf2 = jax.random.split(key, 6)
    x = jax.random.normal(kx, (B, C, H, W), jnp.float32)
    z = jax.random.normal(kz, (B, latent_dim), jnp.float32)
    t_emb = jax.random.normal(kt, (B, time_emb_dim), jnp.float32)

    params = init_film_params(kp, C, latent_dim, time_emb_dim, hidden_dim)
    # film_proj is zero-init in the module spec; randomize it here so the
    # runtime check actually exercises the gamma/beta path (out != x).
    params["fw"] = 0.1 * jax.random.normal(kf1, (2 * hidden_dim, 2 * C), jnp.float32)
    params["fb"] = 0.1 * jax.random.normal(kf2, (1, 2 * C), jnp.float32)

    out = jax.block_until_ready(jax.jit(film_block)(x, z, t_emb, params))

    ref = film_block_ref(x, z, t_emb, params)
    assert out.shape == (B, C, H, W)
    assert jnp.allclose(out, ref, atol=1e-5, rtol=1e-5)
    print("KERNEL_OK")
</pallas_src>

<mosaic_0001>
module attributes {stable_mosaic.version = 11 : i64} {
  func.func @kernel(%arg0: i32, %arg1: memref<8x1xf32, #tpu.memory_space<vmem>>, %arg2: memref<8x1xf32, #tpu.memory_space<vmem>>, %arg3: memref<8x256xf32, #tpu.memory_space<vmem>>, %arg4: memref<8x256xf32, #tpu.memory_space<vmem>>) attributes {dimension_semantics = [#tpu.dimension_semantics<parallel>], iteration_bounds = array<i64: 1>, scalar_prefetch = 0 : i64, scratch_operands = 0 : i64, tpu.core_type = #tpu.core_type<tc>, window_params = [{transform_indices = @transform_0, window_bounds = array<i64: 8, 1>}, {transform_indices = @transform_1, window_bounds = array<i64: 8, 1>}, {transform_indices = @transform_2, window_bounds = array<i64: 8, 256>}, {transform_indices = @transform_3, window_bounds = array<i64: 8, 256>}]} {
    %c0 = arith.constant 0 : index
    %c0_0 = arith.constant 0 : index
    %0 = vector.load %arg1[%c0, %c0_0] : memref<8x1xf32, #tpu.memory_space<vmem>>, vector<8x1xf32>
    %c0_1 = arith.constant 0 : index
    %c0_2 = arith.constant 0 : index
    %1 = vector.load %arg2[%c0_1, %c0_2] : memref<8x1xf32, #tpu.memory_space<vmem>>, vector<8x1xf32>
    %c0_3 = arith.constant 0 : index
    %c0_4 = arith.constant 0 : index
    %2 = vector.load %arg3[%c0_3, %c0_4] : memref<8x256xf32, #tpu.memory_space<vmem>>, vector<8x256xf32>
    %3 = vector.broadcast %0 : vector<8x1xf32> to vector<8x256xf32>
    %4 = arith.mulf %3, %2 : vector<8x256xf32>
    %5 = vector.broadcast %1 : vector<8x1xf32> to vector<8x256xf32>
    %6 = arith.addf %4, %5 : vector<8x256xf32>
    %c0_5 = arith.constant 0 : index
    %c0_6 = arith.constant 0 : index
    %7 = vector.load %arg4[%c0_5, %c0_6] : memref<8x256xf32, #tpu.memory_space<vmem>>, vector<8x256xf32>
    tpu.vector_store %arg4[%c0_5, %c0_6], %6 {strides = array<i32>} : memref<8x256xf32, #tpu.memory_space<vmem>>, vector<8x256xf32>,
    return
  }
  func.func @transform_0(%arg0: i32) -> (i32, i32) {
    %c0_i32 = arith.constant 0 : i32
    %c0_i32_0 = arith.constant 0 : i32
    return %arg0, %c0_i32 : i32, i32
  }
  func.func @transform_1(%arg0: i32) -> (i32, i32) {
    %c0_i32 = arith.constant 0 : i32
    %c0_i32_0 = arith.constant 0 : i32
    return %arg0, %c0_i32 : i32, i32
  }
  func.func @transform_2(%arg0: i32) -> (i32, i32) {
    %c0_i32 = arith.constant 0 : i32
    %c0_i32_0 = arith.constant 0 : i32
    return %arg0, %c0_i32 : i32, i32
  }
  func.func @transform_3(%arg0: i32) -> (i32, i32) {
    %c0_i32 = arith.constant 0 : i32
    %c0_i32_0 = arith.constant 0 : i32
    return %arg0, %c0_i32 : i32, i32
  }
}

module attributes {stable_mosaic.version = 11 : i64} {
  func.func @film_params_kernel(%arg0: memref<2x8xf32, #tpu.memory_space<vmem>>, %arg1: memref<2x8xf32, #tpu.memory_space<vmem>>, %arg2: memref<8x32xf32, #tpu.memory_space<vmem>>, %arg3: memref<32x32xf32, #tpu.memory_space<vmem>>, %arg4: memref<8x32xf32, #tpu.memory_space<vmem>>, %arg5: memref<8x32xf32, #tpu.memory_space<vmem>>, %arg6: memref<32x32xf32, #tpu.memory_space<vmem>>, %arg7: memref<8x32xf32, #tpu.memory_space<vmem>>, %arg8: memref<32x4xf32, #tpu.memory_space<vmem>>, %arg9: memref<32x4xf32, #tpu.memory_space<vmem>>, %arg10: memref<32x4xf32, #tpu.memory_space<vmem>>, %arg11: memref<32x4xf32, #tpu.memory_space<vmem>>, %arg12: memref<1x4xf32, #tpu.memory_space<vmem>>, %arg13: memref<1x4xf32, #tpu.memory_space<vmem>>, %arg14: memref<2x4xf32, #tpu.memory_space<vmem>>, %arg15: memref<2x4xf32, #tpu.memory_space<vmem>>) attributes {dimension_semantics = [], scalar_prefetch = 0 : i64, scratch_operands = 0 : i64, tpu.core_type = #tpu.core_type<tc>} {
    %c0 = arith.constant 0 : index
    %c0_0 = arith.constant 0 : index
    %0 = vector.load %arg0[%c0, %c0_0] : memref<2x8xf32, #tpu.memory_space<vmem>>, vector<2x8xf32>
    %c0_1 = arith.constant 0 : index
    %c0_2 = arith.constant 0 : index
    %1 = vector.load %arg4[%c0_1, %c0_2] : memref<8x32xf32, #tpu.memory_space<vmem>>, vector<8x32xf32>
    %c0_3 = arith.constant 0 : index
    %c0_4 = arith.constant 0 : index
    %2 = vector.load %arg2[%c0_3, %c0_4] : memref<8x32xf32, #tpu.memory_space<vmem>>, vector<8x32xf32>
    %cst = arith.constant dense<0.000000e+00> : vector<2x32xf32>
    %3 = tpu.matmul %0, %2, %cst {dimension_numbers = #tpu.dot_dimension_numbers<[1], [0], [0], [1], [0, 0, 1, 1], [], []>} : vector<2x8xf32>, vector<8x32xf32>, vector<2x32xf32> -> vector<2x32xf32>
    %4 = vector.extract_strided_slice %1 {offsets = [0, 0], sizes = [1, 32], strides = [1, 1]} : vector<8x32xf32> to vector<1x32xf32>
    %5 = vector.broadcast %4 : vector<1x32xf32> to vector<2x32xf32>
    %6 = arith.addf %3, %5 : vector<2x32xf32>
    %cst_5 = arith.constant 0.000000e+00 : f32
    %7 = vector.broadcast %cst_5 : f32 to vector<2x32xf32>
    %8 = arith.maximumf %6, %7 : vector<2x32xf32>
    %9 = vector.extract_strided_slice %1 {offsets = [1, 0], sizes = [1, 32], strides = [1, 1]} : vector<8x32xf32> to vector<1x32xf32>
    %10 = vector.extract_strided_slice %1 {offsets = [2, 0], sizes = [1, 32], strides = [1, 1]} : vector<8x32xf32> to vector<1x32xf32>
    %cst_6 = arith.constant dense<0.000000e+00> : vector<2xf32>
    %11 = vector.multi_reduction <add>, %8, %cst_6 [1] : vector<2x32xf32> to vector<2xf32>
    %12 = vector.shape_cast %11 : vector<2xf32> to vector<2x1xf32>
    %cst_7 = arith.constant 3.200000e+01 : f32
    %13 = vector.broadcast %cst_7 : f32 to vector<2x1xf32>
    %14 = arith.divf %12, %13 : vector<2x1xf32>
    %15 = vector.broadcast %14 : vector<2x1xf32> to vector<2x32xf32>
    %16 = arith.subf %8, %15 : vector<2x32xf32>
    %17 = arith.mulf %16, %16 : vector<2x32xf32>
    %cst_8 = arith.constant dense<0.000000e+00> : vector<2xf32>
    %18 = vector.multi_reduction <add>, %17, %cst_8 [1] : vector<2x32xf32> to vector<2xf32>
    %19 = vector.shape_cast %18 : vector<2xf32> to vector<2x1xf32>
    %cst_9 = arith.constant 3.200000e+01 : f32
    %20 = vector.broadcast %cst_9 : f32 to vector<2x1xf32>
    %21 = arith.divf %19, %20 : vector<2x1xf32>
    %22 = vector.broadcast %14 : vector<2x1xf32> to vector<2x32xf32>
    %23 = arith.subf %8, %22 : vector<2x32xf32>
    %cst_10 = arith.constant 9.99999974E-6 : f32
    %24 = vector.broadcast %cst_10 : f32 to vector<2x1xf32>
    %25 = arith.addf %21, %24 : vector<2x1xf32>
    %26 = math.rsqrt %25 : vector<2x1xf32>
    %27 = vector.broadcast %26 : vector<2x1xf32> to vector<2x32xf32>
    %28 = arith.mulf %23, %27 : vector<2x32xf32>
    %29 = vector.broadcast %9 : vector<1x32xf32> to vector<2x32xf32>
    %30 = arith.mulf %28, %29 : vector<2x32xf32>
    %31 = vector.broadcast %10 : vector<1x32xf32> to vector<2x32xf32>
    %32 = arith.addf %30, %31 : vector<2x32xf32>
    %c0_11 = arith.constant 0 : index
    %c0_12 = arith.constant 0 : index
    %33 = vector.load %arg3[%c0_11, %c0_12] : memref<32x32xf32, #tpu.memory_space<vmem>>, vector<32x32xf32>
    %cst_13 = arith.constant dense<0.000000e+00> : vector<2x32xf32>
    %34 = tpu.matmul %32, %33, %cst_13 {dimension_numbers = #tpu.dot_dimension_numbers<[1], [0], [0], [1], [0, 0, 1, 1], [], []>} : vector<2x32xf32>, vector<32x32xf32>, vector<2x32xf32> -> vector<2x32xf32>
    %35 = vector.extract_strided_slice %1 {offsets = [3, 0], sizes = [1, 32], strides = [1, 1]} : vector<8x32xf32> to vector<1x32xf32>
    %36 = vector.broadcast %35 : vector<1x32xf32> to vector<2x32xf32>
    %37 = arith.addf %34, %36 : vector<2x32xf32>
    %38 = vector.extract_strided_slice %1 {offsets = [4, 0], sizes = [1, 32], strides = [1, 1]} : vector<8x32xf32> to vector<1x32xf32>
    %39 = vector.extract_strided_slice %1 {offsets = [5, 0], sizes = [1, 32], strides = [1, 1]} : vector<8x32xf32> to vector<1x32xf32>
    %cst_14 = arith.constant dense<0.000000e+00> : vector<2xf32>
    %40 = vector.multi_reduction <add>, %37, %cst_14 [1] : vector<2x32xf32> to vector<2xf32>
    %41 = vector.shape_cast %40 : vector<2xf32> to vector<2x1xf32>
    %cst_15 = arith.constant 3.200000e+01 : f32
    %42 = vector.broadcast %cst_15 : f32 to vector<2x1xf32>
    %43 = arith.divf %41, %42 : vector<2x1xf32>
    %44 = vector.broadcast %43 : vector<2x1xf32> to vector<2x32xf32>
    %45 = arith.subf %37, %44 : vector<2x32xf32>
    %46 = arith.mulf %45, %45 : vector<2x32xf32>
    %cst_16 = arith.constant dense<0.000000e+00> : vector<2xf32>
    %47 = vector.multi_reduction <add>, %46, %cst_16 [1] : vector<2x32xf32> to vector<2xf32>
    %48 = vector.shape_cast %47 : vector<2xf32> to vector<2x1xf32>
    %cst_17 = arith.constant 3.200000e+01 : f32
    %49 = vector.broadcast %cst_17 : f32 to vector<2x1xf32>
    %50 = arith.divf %48, %49 : vector<2x1xf32>
    %51 = vector.broadcast %43 : vector<2x1xf32> to vector<2x32xf32>
    %52 = arith.subf %37, %51 : vector<2x32xf32>
    %cst_18 = arith.constant 9.99999974E-6 : f32
    %53 = vector.broadcast %cst_18 : f32 to vector<2x1xf32>
    %54 = arith.addf %50, %53 : vector<2x1xf32>
    %55 = math.rsqrt %54 : vector<2x1xf32>
    %56 = vector.broadcast %55 : vector<2x1xf32> to vector<2x32xf32>
    %57 = arith.mulf %52, %56 : vector<2x32xf32>
    %58 = vector.broadcast %38 : vector<1x32xf32> to vector<2x32xf32>
    %59 = arith.mulf %57, %58 : vector<2x32xf32>
    %60 = vector.broadcast %39 : vector<1x32xf32> to vector<2x32xf32>
    %61 = arith.addf %59, %60 : vector<2x32xf32>
    %c0_19 = arith.constant 0 : index
    %c0_20 = arith.constant 0 : index
    %62 = vector.load %arg1[%c0_19, %c0_20] : memref<2x8xf32, #tpu.memory_space<vmem>>, vector<2x8xf32>
    %c0_21 = arith.constant 0 : index
    %c0_22 = arith.constant 0 : index
    %63 = vector.load %arg7[%c0_21, %c0_22] : memref<8x32xf32, #tpu.memory_space<vmem>>, vector<8x32xf32>
    %c0_23 = arith.constant 0 : index
    %c0_24 = arith.constant 0 : index
    %64 = vector.load %arg5[%c0_23, %c0_24] : memref<8x32xf32, #tpu.memory_space<vmem>>, vector<8x32xf32>
    %cst_25 = arith.constant dense<0.000000e+00> : vector<2x32xf32>
    %65 = tpu.matmul %62, %64, %cst_25 {dimension_numbers = #tpu.dot_dimension_numbers<[1], [0], [0], [1], [0, 0, 1, 1], [], []>} : vector<2x8xf32>, vector<8x32xf32>, vector<2x32xf32> -> vector<2x32xf32>
    %66 = vector.extract_strided_slice %63 {offsets = [0, 0], sizes = [1, 32], strides = [1, 1]} : vector<8x32xf32> to vector<1x32xf32>
    %67 = vector.broadcast %66 : vector<1x32xf32> to vector<2x32xf32>
    %68 = arith.addf %65, %67 : vector<2x32xf32>
    %cst_26 = arith.constant 0.000000e+00 : f32
    %69 = vector.broadcast %cst_26 : f32 to vector<2x32xf32>
    %70 = arith.maximumf %68, %69 : vector<2x32xf32>
    %71 = vector.extract_strided_slice %63 {offsets = [1, 0], sizes = [1, 32], strides = [1, 1]} : vector<8x32xf32> to vector<1x32xf32>
    %72 = vector.extract_strided_slice %63 {offsets = [2, 0], sizes = [1, 32], strides = [1, 1]} : vector<8x32xf32> to vector<1x32xf32>
    %cst_27 = arith.constant dense<0.000000e+00> : vector<2xf32>
    %73 = vector.multi_reduction <add>, %70, %cst_27 [1] : vector<2x32xf32> to vector<2xf32>
    %74 = vector.shape_cast %73 : vector<2xf32> to vector<2x1xf32>
    %cst_28 = arith.constant 3.200000e+01 : f32
    %75 = vector.broadcast %cst_28 : f32 to vector<2x1xf32>
    %76 = arith.divf %74, %75 : vector<2x1xf32>
    %77 = vector.broadcast %76 : vector<2x1xf32> to vector<2x32xf32>
    %78 = arith.subf %70, %77 : vector<2x32xf32>
    %79 = arith.mulf %78, %78 : vector<2x32xf32>
    %cst_29 = arith.constant dense<0.000000e+00> : vector<2xf32>
    %80 = vector.multi_reduction <add>, %79, %cst_29 [1] : vector<2x32xf32> to vector<2xf32>
    %81 = vector.shape_cast %80 : vector<2xf32> to vector<2x1xf32>
    %cst_30 = arith.constant 3.200000e+01 : f32
    %82 = vector.broadcast %cst_30 : f32 to vector<2x1xf32>
    %83 = arith.divf %81, %82 : vector<2x1xf32>
    %84 = vector.broadcast %76 : vector<2x1xf32> to vector<2x32xf32>
    %85 = arith.subf %70, %84 : vector<2x32xf32>
    %cst_31 = arith.constant 9.99999974E-6 : f32
    %86 = vector.broadcast %cst_31 : f32 to vector<2x1xf32>
    %87 = arith.addf %83, %86 : vector<2x1xf32>
    %88 = math.rsqrt %87 : vector<2x1xf32>
    %89 = vector.broadcast %88 : vector<2x1xf32> to vector<2x32xf32>
    %90 = arith.mulf %85, %89 : vector<2x32xf32>
    %91 = vector.broadcast %71 : vector<1x32xf32> to vector<2x32xf32>
    %92 = arith.mulf %90, %91 : vector<2x32xf32>
    %93 = vector.broadcast %72 : vector<1x32xf32> to vector<2x32xf32>
    %94 = arith.addf %92, %93 : vector<2x32xf32>
    %c0_32 = arith.constant 0 : index
    %c0_33 = arith.constant 0 : index
    %95 = vector.load %arg6[%c0_32, %c0_33] : memref<32x32xf32, #tpu.memory_space<vmem>>, vector<32x32xf32>
    %cst_34 = arith.constant dense<0.000000e+00> : vector<2x32xf32>
    %96 = tpu.matmul %94, %95, %cst_34 {dimension_numbers = #tpu.dot_dimension_numbers<[1], [0], [0], [1], [0, 0, 1, 1], [], []>} : vector<2x32xf32>, vector<32x32xf32>, vector<2x32xf32> -> vector<2x32xf32>
    %97 = vector.extract_strided_slice %63 {offsets = [3, 0], sizes = [1, 32], strides = [1, 1]} : vector<8x32xf32> to vector<1x32xf32>
    %98 = vector.broadcast %97 : vector<1x32xf32> to vector<2x32xf32>
    %99 = arith.addf %96, %98 : vector<2x32xf32>
    %100 = vector.extract_strided_slice %63 {offsets = [4, 0], sizes = [1, 32], strides = [1, 1]} : vector<8x32xf32> to vector<1x32xf32>
    %101 = vector.extract_strided_slice %63 {offsets = [5, 0], sizes = [1, 32], strides = [1, 1]} : vector<8x32xf32> to vector<1x32xf32>
    %cst_35 = arith.constant dense<0.000000e+00> : vector<2xf32>
    %102 = vector.multi_reduction <add>, %99, %cst_35 [1] : vector<2x32xf32> to vector<2xf32>
    %103 = vector.shape_cast %102 : vector<2xf32> to vector<2x1xf32>
    %cst_36 = arith.constant 3.200000e+01 : f32
    %104 = vector.broadcast %cst_36 : f32 to vector<2x1xf32>
    %105 = arith.divf %103, %104 : vector<2x1xf32>
    %106 = vector.broadcast %105 : vector<2x1xf32> to vector<2x32xf32>
    %107 = arith.subf %99, %106 : vector<2x32xf32>
    %108 = arith.mulf %107, %107 : vector<2x32xf32>
    %cst_37 = arith.constant dense<0.000000e+00> : vector<2xf32>
    %109 = vector.multi_reduction <add>, %108, %cst_37 [1] : vector<2x32xf32> to vector<2xf32>
    %110 = vector.shape_cast %109 : vector<2xf32> to vector<2x1xf32>
    %cst_38 = arith.constant 3.200000e+01 : f32
    %111 = vector.broadcast %cst_38 : f32 to vector<2x1xf32>
    %112 = arith.divf %110, %111 : vector<2x1xf32>
    %113 = vector.broadcast %105 : vector<2x1xf32> to vector<2x32xf32>
    %114 = arith.subf %99, %113 : vector<2x32xf32>
    %cst_39 = arith.constant 9.99999974E-6 : f32
    %115 = vector.broadcast %cst_39 : f32 to vector<2x1xf32>
    %116 = arith.addf %112, %115 : vector<2x1xf32>
    %117 = math.rsqrt %116 : vector<2x1xf32>
    %118 = vector.broadcast %117 : vector<2x1xf32> to vector<2x32xf32>
    %119 = arith.mulf %114, %118 : vector<2x32xf32>
    %120 = vector.broadcast %100 : vector<1x32xf32> to vector<2x32xf32>
    %121 = arith.mulf %119, %120 : vector<2x32xf32>
    %122 = vector.broadcast %101 : vector<1x32xf32> to vector<2x32xf32>
    %123 = arith.addf %121, %122 : vector<2x32xf32>
    %c0_40 = arith.constant 0 : index
    %c0_41 = arith.constant 0 : index
    %124 = vector.load %arg8[%c0_40, %c0_41] : memref<32x4xf32, #tpu.memory_space<vmem>>, vector<32x4xf32>
    %cst_42 = arith.constant dense<0.000000e+00> : vector<2x4xf32>
    %125 = tpu.matmul %61, %124, %cst_42 {dimension_numbers = #tpu.dot_dimension_numbers<[1], [0], [0], [1], [0, 0, 1, 1], [], []>} : vector<2x32xf32>, vector<32x4xf32>, vector<2x4xf32> -> vector<2x4xf32>
    %c0_43 = arith.constant 0 : index
    %c0_44 = arith.constant 0 : index
    %126 = vector.load %arg10[%c0_43, %c0_44] : memref<32x4xf32, #tpu.memory_space<vmem>>, vector<32x4xf32>
    %cst_45 = arith.constant dense<0.000000e+00> : vector<2x4xf32>
    %127 = tpu.matmul %123, %126, %cst_45 {dimension_numbers = #tpu.dot_dimension_numbers<[1], [0], [0], [1], [0, 0, 1, 1], [], []>} : vector<2x32xf32>, vector<32x4xf32>, vector<2x4xf32> -> vector<2x4xf32>
    %128 = arith.addf %125, %127 : vector<2x4xf32>
    %c0_46 = arith.constant 0 : index
    %c0_47 = arith.constant 0 : index
    %129 = vector.load %arg12[%c0_46, %c0_47] : memref<1x4xf32, #tpu.memory_space<vmem>>, vector<1x4xf32>
    %130 = vector.broadcast %129 : vector<1x4xf32> to vector<2x4xf32>
    %131 = arith.addf %128, %130 : vector<2x4xf32>
    %cst_48 = arith.constant 1.000000e+00 : f32
    %132 = vector.broadcast %cst_48 : f32 to vector<2x4xf32>
    %133 = arith.addf %132, %131 : vector<2x4xf32>
    %c0_49 = arith.constant 0 : index
    %c0_50 = arith.constant 0 : index
    %134 = vector.load %arg14[%c0_49, %c0_50] : memref<2x4xf32, #tpu.memory_space<vmem>>, vector<2x4xf32>
    tpu.vector_store %arg14[%c0_49, %c0_50], %133 {strides = array<i32>} : memref<2x4xf32, #tpu.memory_space<vmem>>, vector<2x4xf32>,
    %c0_51 = arith.constant 0 : index
    %c0_52 = arith.constant 0 : index
    %135 = vector.load %arg9[%c0_51, %c0_52] : memref<32x4xf32, #tpu.memory_space<vmem>>, vector<32x4xf32>
    %cst_53 = arith.constant dense<0.000000e+00> : vector<2x4xf32>
    %136 = tpu.matmul %61, %135, %cst_53 {dimension_numbers = #tpu.dot_dimension_numbers<[1], [0], [0], [1], [0, 0, 1, 1], [], []>} : vector<2x32xf32>, vector<32x4xf32>, vector<2x4xf32> -> vector<2x4xf32>
    %c0_54 = arith.constant 0 : index
    %c0_55 = arith.constant 0 : index
    %137 = vector.load %arg11[%c0_54, %c0_55] : memref<32x4xf32, #tpu.memory_space<vmem>>, vector<32x4xf32>
    %cst_56 = arith.constant dense<0.000000e+00> : vector<2x4xf32>
    %138 = tpu.matmul %123, %137, %cst_56 {dimension_numbers = #tpu.dot_dimension_numbers<[1], [0], [0], [1], [0, 0, 1, 1], [], []>} : vector<2x32xf32>, vector<32x4xf32>, vector<2x4xf32> -> vector<2x4xf32>
    %139 = arith.addf %136, %138 : vector<2x4xf32>
    %c0_57 = arith.constant 0 : index
    %c0_58 = arith.constant 0 : index
    %140 = vector.load %arg13[%c0_57, %c0_58] : memref<1x4xf32, #tpu.memory_space<vmem>>, vector<1x4xf32>
    %141 = vector.broadcast %140 : vector<1x4xf32> to vector<2x4xf32>
    %142 = arith.addf %139, %141 : vector<2x4xf32>
    %c0_59 = arith.constant 0 : index
    %c0_60 = arith.constant 0 : index
    %143 = vector.load %arg15[%c0_59, %c0_60] : memref<2x4xf32, #tpu.memory_space<vmem>>, vector<2x4xf32>
    tpu.vector_store %arg15[%c0_59, %c0_60], %142 {strides = array<i32>} : memref<2x4xf32, #tpu.memory_space<vmem>>, vector<2x4xf32>,
    return
  }
}

</mosaic_0001>

<bundles_post_ra>
// kernel: film_block.3
= control target key start
LH: loop header
LB: loop body
LE: loop exit
PB: predicated region body
PF: predicated region fallthrough
CT: control target
= control target key end

     0   :  { %v40_v0 = vmov 0   ;;  %s79_s0 = inlined_call_operand.vmem [shape: f32[8,1], index: 0, kind: input, shape index: {}]   ;;  %s80_s1 = inlined_call_operand.vmem [shape: f32[8,1], index: 1, kind: input, shape index: {}]   ;;  %s81_s2 = inlined_call_operand.vmem [shape: f32[8,256], index: 2, kind: input, shape index: {}]   ;;  %s82_s3 = inlined_call_operand.vmem [shape: f32[8,256], index: 3, kind: output, shape index: {}]  }
   0x1   :  { %39 = vset.pattern.permute.xlu0 %v40_v0  ;;  %v14_v1 = vld [vmem:[%s79_s0] sm:$0xff]  ;;  %v17_v4 = vld [vmem:[%s81_s2 + $0x8] sm:$0xff] }
   0x2   :  { %20 = vperm.xlu0 %39, %v14_v1   ;;  %v15_v2 = vld [vmem:[%s80_s1] sm:$0xff] }
   0x3   :  { %v16_v3 = vld [vmem:[%s81_s2] sm:$0xff] }
   0x6   :  { %27 = vperm.xlu0 %39, %v15_v2  }
  0x81   :  { %v21_v5 = vpop.permute.xlu0 %20 }
  0x82   :  { %v23_v6 = vmul.f32 %v21_v5, %v16_v3  ;;  %v24_v7 = vmul.f32 %v21_v5, %v17_v4 }
  0x85   :  { %v28_v8 = vpop.permute.xlu0 %27 }
  0x86   :  { %v30_v9 = vadd.f32 %v28_v8, %v23_v6  ;;  %v31_v10 = vadd.f32 %v28_v8, %v24_v7 }
  0x88   :  { %32 = vst [vmem:[%s82_s3] sm:$0xff] %v30_v9  ;;  %33 = vst [vmem:[%s82_s3 + $0x8] sm:$0xff] %v31_v10 }

// kernel: film_block.2
= control target key start
LH: loop header
LB: loop body
LE: loop exit
PB: predicated region body
PF: predicated region fallthrough
CT: control target
= control target key end

     0   :  { %vm56_vm0 = vcmask 64512   ;;  %v966_v0 = vmov 0.0   ;;  %vm967_vm1 = vmmov 0   ;;  %v52_v5 = vlaneseq  ;;  %s1221_s2 = inlined_call_operand.vmem [shape: f32[8,32], index: 2, kind: input, shape index: {}]   ;;  %s1222_s0 = inlined_call_operand.vmem [shape: f32[2,8], index: 0, kind: input, shape index: {}]   ;;  %s1223_s5 = inlined_call_operand.vmem [shape: f32[8,32], index: 5, kind: input, shape index: {}]   ;;  %s1224_s1 = inlined_call_operand.vmem [shape: f32[2,8], index: 1, kind: input, shape index: {}]   ;;  %s1225_s4 = inlined_call_operand.vmem [shape: f32[8,32], index: 4, kind: input, shape index: {}]   ;;  %s1226_s7 = inlined_call_operand.vmem [shape: f32[8,32], index: 7, kind: input, shape index: {}]   ;;  %s1227_s3 = inlined_call_operand.vmem [shape: f32[32,32], index: 3, kind: input, shape index: {}]   ;;  %s1228_s6 = inlined_call_operand.vmem [shape: f32[32,32], index: 6, kind: input, shape index: {}]   ;;  %s1229_s8 = inlined_call_operand.vmem [shape: f32[32,4], index: 8, kind: input, shape index: {}]   ;;  %s1230_s10 = inlined_call_operand.vmem [shape: f32[32,4], index: 10, kind: input, shape index: {}]   ;;  %s1231_s9 = inlined_call_operand.vmem [shape: f32[32,4], index: 9, kind: input, shape index: {}]   ;;  %s1232_s11 = inlined_call_operand.vmem [shape: f32[32,4], index: 11, kind: input, shape index: {}]   ;;  %s1233_s12 = inlined_call_operand.vmem [shape: f32[1,4], index: 12, kind: input, shape index: {}]   ;;  %s1234_s14 = inlined_call_operand.vmem [shape: f32[2,4], index: 14, kind: output, shape index: {0}]   ;;  %s1235_s13 = inlined_call_operand.vmem [shape: f32[1,4], index: 13, kind: input, shape index: {}]   ;;  %s1236_s15 = inlined_call_operand.vmem [shape: f32[2,4], index: 15, kind: output, shape index: {1}]  }
   0x1   :  { %843 = vmatprep.subr.mxu1 %v966_v0  ;;  %v51_v1 = vld [vmem:[%s1221_s2] sm:$0xff]  ;;  %845 = vmatprep.mubr.msk.f32.mxu1 %vm967_vm1, %v966_v0  ;;  %vm131_vm2 = vcmask 254976   ;;  %v157_v33 = vld [vmem:[%s1227_s3 + $0x8] sm:$0xff]  ;;  %v968_v35 = vmov 0.0|0.0   ;;  %v158_v36 = vld [vmem:[%s1227_s3 + $0x10] sm:$0xff]  ;;  %vm164_vm3 = vcmask 261120  }
   0x2   :  { %v49_v2 = vld [vmem:[%s1222_s0] sm:$0x3]  ;;  %844 = vmatpush3.msra.mxu1 %v51_v1  ;;  %859 = vmatprep.subr.mxu0 %v966_v0  ;;  %v1073_v6 = vshrl.u32 %v52_v5, 7  ;;  %v159_v37 = vld [vmem:[%s1227_s3 + $0x18] sm:$0xff]  ;;  %v366_v40 = vld [vmem:[%s1228_s6 + $0x8] sm:$0xff]  ;;  %vm632_vm4 = vcmask 25600  }
   0x3   :  { %v263_v3 = vld [vmem:[%s1223_s5] sm:$0xff]  ;;  %846 = vmatmul.mubr.msk.f32.vlgmr.msra.gmra.mrb[0].mxu1 %vm56_vm0, %v49_v2  ;;  %861 = vmatprep.mubr.msk.f32.mxu0 %vm967_vm1, %v966_v0  ;;  %v923_v39 = vpack.c.bf16 %v159_v37, %v158_v36  ;;  %v367_v42 = vld [vmem:[%s1228_s6 + $0x10] sm:$0xff]  ;;  %v368_v43 = vld [vmem:[%s1228_s6 + $0x18] sm:$0xff] }
   0x4   :  { %v261_v4 = vld [vmem:[%s1224_s1] sm:$0x3]  ;;  %860 = vmatpush3.msra.mxu0 %v263_v3  ;;  %856 = vmatprep.mubr.msk.f32.mxu1 %vm967_vm1, %v966_v0  ;;  %v54_v7 = vsub.s32 0, %v1073_v6  ;;  %v929_v44 = vpack.c.bf16 %v368_v43, %v367_v42  ;;  %v148_v51 = vsub.s32 1, %v1073_v6  ;;  %v153_v52 = vsub.s32 2, %v1073_v6  ;;  %v475_v36 = vld [vmem:[%s1230_s10 + $0x10] sm:$0xff] }
   0x5   :  { %862 = vmatmul.mubr.msk.f32.vlgmr.msra.gmra.mrb[0].mxu0 %vm56_vm0, %v261_v4  ;;  %v1079_v8 = vld [vmem:[%s1225_s4] sm:$0xff]  ;;  %919 = vmatprep.subr.bf16.mxu1 %v968_v35  ;;  %v162_v2 = vsub.s32 3, %v1073_v6  ;;  %v476_v37 = vld [vmem:[%s1230_s10 + $0x18] sm:$0xff] }
   0x6   :  { %872 = vmatprep.mubr.msk.f32.mxu0 %vm967_vm1, %v966_v0  ;;  %v1084_v9 = vld [vmem:[%s1226_s7] sm:$0xff]  ;;  %v55_v10 = vrot.slane %v1079_v8, %v54_v7  ;;  %925 = vmatprep.subr.bf16.mxu0 %v968_v35  ;;  %v149_v53 = vrot.slane %v1079_v8, %v148_v51  ;;  %v154_v56 = vrot.slane %v1079_v8, %v153_v52 }
   0x7   :  { %v267_v11 = vrot.slane %v1084_v9, %v54_v7  ;;  %v156_v32 = vld [vmem:[%s1227_s3] sm:$0xff]  ;;  %v358_v58 = vrot.slane %v1084_v9, %v148_v51  ;;  %v363_v62 = vrot.slane %v1084_v9, %v153_v52  ;;  %v163_v3 = vrot.slane %v1079_v8, %v162_v2  ;;  %v635_v52 = vld [vmem:[%s1231_s9 + $0x8] sm:$0xff] }
   0x8   :  { %v920_v34 = vpack.c.bf16 %v157_v33, %v156_v32  ;;  %v365_v38 = vld [vmem:[%s1228_s6] sm:$0xff]  ;;  %v472_v33 = vld [vmem:[%s1229_s8 + $0x18] sm:$0xff] }
   0x9   :  { %v926_v41 = vpack.c.bf16 %v366_v40, %v365_v38  ;;  %v935_v38 = vpack.c.bf16 %v476_v37, %v475_v36  ;;  %v634_v51 = vld [vmem:[%s1231_s9] sm:$0xff] }
   0xa   :  { %921 = vmatpush3.bf16.msra.mxu1 %v920_v34 }
   0xb   :  { %922 = vmatprep.subr.bf16.mxu1 %v968_v35  ;;  %927 = vmatpush3.bf16.msra.mxu0 %v926_v41 }
   0xc   :  { %928 = vmatprep.subr.bf16.mxu0 %v968_v35 }
   0xe   :  { %924 = vmatpush3.bf16.msra.mxu1 %v923_v39 }
   0xf   :  { %931 = vmatprep.subr.bf16.mxu1 %v968_v35  ;;  %930 = vmatpush3.bf16.msra.mxu0 %v929_v44 }
  0x10   :  { %937 = vmatprep.subr.bf16.mxu0 %v968_v35 }
  0xd6   :  { %v126_v12 = vpop.f32.mrb[0].mxu1 }
  0xd7   :  { %v127_v13 = vadd.f32 %v126_v12, %v55_v10  ;;  %v847_v14 = vpop.f32.mrb[1].mxu1  ;;  %v372_v10 = vrot.slane %v1084_v9, %v162_v2  ;;  %v640_v2 = vld [vmem:[%s1232_s11 + $0x10] sm:$0xff] }
  0xd8   :  { %v337_v15 = vpop.f32.mrb[0].mxu0 }
  0xd9   :  { %v130_v16 = vmax.f32 %v127_v13, 0.0  ;;  %v338_v17 = vadd.f32 %v337_v15, %v267_v11  ;;  %v863_v18 = vpop.f32.mrb[1].mxu0 }
  0xdb   :  { %v341_v19 = vmax.f32 %v338_v17, 0.0  ;;  %v132_v20 = vsel %vm131_vm2, %v130_v16, 0.0 }
  0xdc   :  { %133 = vadd.xlane.f32.xlu0 %v132_v20 }
  0xdd   :  { %v342_v21 = vsel %vm131_vm2, %v341_v19, 0.0 }
  0xe0   :  { %343 = vadd.xlane.f32.xlu0 %v342_v21 }
 0x169   :  { %v134_v22 = vpop.xlane.xlu0 %133 }
 0x16a   :  { %v136_v23 = vmul.f32 0.03125, %v134_v22 }
 0x16c   :  { %v137_v24 = vsub.f32 %v130_v16, %v136_v23 }
 0x16d   :  { %v344_v25 = vpop.xlane.xlu0 %343 }
 0x16e   :  { %v345_v26 = vmul.f32 0.03125, %v344_v25  ;;  %v138_v27 = vmul.f32 %v137_v24, %v137_v24 }
 0x170   :  { %v346_v28 = vsub.f32 %v341_v19, %v345_v26  ;;  %v139_v29 = vsel %vm131_vm2, %v138_v27, 0.0  ;;  %v469_v26 = vld [vmem:[%s1229_s8] sm:$0xff]  ;;  %v470_v27 = vld [vmem:[%s1229_s8 + $0x8] sm:$0xff] }
 0x171   :  { %140 = vadd.xlane.f32.xlu1 %v139_v29  ;;  %v473_v29 = vld [vmem:[%s1230_s10] sm:$0xff] }
 0x172   :  { %v347_v30 = vmul.f32 %v346_v28, %v346_v28 }
 0x174   :  { %v348_v31 = vsel %vm131_vm2, %v347_v30, 0.0  ;;  %v474_v30 = vld [vmem:[%s1230_s10 + $0x8] sm:$0xff] }
 0x175   :  { %349 = vadd.xlane.f32.xlu1 %v348_v31  ;;  %v471_v31 = vld [vmem:[%s1229_s8 + $0x10] sm:$0xff]  ;;  %v932_v32 = vpack.c.bf16 %v474_v30, %v473_v29 }
 0x176   :  { %v941_v34 = vpack.c.bf16 %v472_v33, %v471_v31 }
 0x1fe   :  { %v141_v45 = vpop.xlane.xlu1 %140 }
 0x1ff   :  { %v142_v46 = vmul.f32 0.03125, %v141_v45  ;;  %v253_v45 = vsub.s32 4, %v1073_v6 }
 0x201   :  { %v143_v47 = vadd.f32 1e-05, %v142_v46  ;;  %v258_v46 = vsub.s32 5, %v1073_v6  ;;  %v638_v6 = vld [vmem:[%s1232_s11] sm:$0xff] }
 0x202   :  { %v350_v48 = vpop.xlane.xlu1 %349 }
 0x203   :  { %958 = vrsqrt.f32 %v143_v47  ;;  %v351_v49 = vmul.f32 0.03125, %v350_v48  ;;  %v254_v47 = vrot.slane %v1079_v8, %v253_v45 }
 0x205   :  { %v352_v50 = vadd.f32 1e-05, %v351_v49 }
 0x207   :  { %960 = vrsqrt.f32 %v352_v50  ;;  %v259_v50 = vrot.slane %v1079_v8, %v258_v46  ;;  %v467_v8 = vrot.slane %v1084_v9, %v258_v46 }
 0x20d   :  { %v959_v54 = vpop.eup %958 }
 0x20e   :  { %v145_v55 = vmul.f32 %v959_v54, %v137_v24  ;;  %v462_v54 = vrot.slane %v1084_v9, %v253_v45 }
 0x210   :  { %v150_v57 = vmul.f32 %v149_v53, %v145_v55 }
 0x211   :  { %v961_v59 = vpop.eup %960 }
 0x212   :  { %v354_v60 = vmul.f32 %v961_v59, %v346_v28  ;;  %v155_v61 = vadd.f32 %v154_v56, %v150_v57  ;;  %v938_v28 = vpack.c.bf16 %v470_v27, %v469_v26  ;;  %v950_v56 = vpack.c.bf16 %v635_v52, %v634_v51  ;;  %v639_v59 = vld [vmem:[%s1232_s11 + $0x8] sm:$0xff] }
 0x214   :  { %857 = vmatmul.mubr.msk.f32.vlgmr.msra.gmra.mrb[2].mxu1 %vm164_vm3, %v155_v61  ;;  %v359_v63 = vmul.f32 %v358_v58, %v354_v60  ;;  %v636_v60 = vld [vmem:[%s1231_s9 + $0x10] sm:$0xff]  ;;  %v637_v61 = vld [vmem:[%s1231_s9 + $0x18] sm:$0xff] }
 0x215   :  { %883 = vmatprep.mubr.msk.f32.mxu1 %vm967_vm1, %v966_v0  ;;  %933 = vmatpush3.bf16.msra.mxu1 %v932_v32 }
 0x216   :  { %v364_v1 = vadd.f32 %v363_v62, %v359_v63  ;;  %934 = vmatprep.subr.bf16.mxu1 %v968_v35  ;;  %v944_v63 = vpack.c.bf16 %v639_v59, %v638_v6 }
 0x218   :  { %873 = vmatmul.mubr.msk.f32.vlgmr.msra.gmra.mrb[2].mxu0 %vm164_vm3, %v364_v1  ;;  %v953_v1 = vpack.c.bf16 %v637_v61, %v636_v60 }
 0x219   :  { %894 = vmatprep.mubr.msk.f32.mxu0 %vm967_vm1, %v966_v0  ;;  %939 = vmatpush3.bf16.msra.mxu0 %v938_v28 }
 0x21a   :  { %940 = vmatprep.subr.bf16.mxu0 %v968_v35  ;;  %936 = vmatpush3.bf16.msra.mxu1 %v935_v38 }
 0x21b   :  { %943 = vmatprep.subr.bf16.mxu1 %v968_v35 }
 0x21d   :  { %942 = vmatpush3.bf16.msra.mxu0 %v941_v34 }
 0x21e   :  { %949 = vmatprep.subr.bf16.mxu0 %v968_v35 }
 0x2e7   :  { %v234_v4 = vpop.f32.mrb[2].mxu1 }
 0x2e8   :  { %v235_v5 = vadd.f32 %v234_v4, %v163_v3  ;;  %v858_v7 = vpop.f32.mrb[3].mxu1  ;;  %v641_v3 = vld [vmem:[%s1232_s11 + $0x18] sm:$0xff] }
 0x2e9   :  { %v947_v4 = vpack.c.bf16 %v641_v3, %v640_v2 }
 0x2ea   :  { %v238_v11 = vsel %vm131_vm2, %v235_v5, 0.0 }
 0x2eb   :  { %v442_v12 = vpop.f32.mrb[2].mxu0  ;;  %239 = vadd.xlane.f32.xlu0 %v238_v11  ;;  %v805_v11 = vld [vmem:[%s1233_s12] ss:$0 sm:$0xff] }
 0x2ec   :  { %v443_v13 = vadd.f32 %v442_v12, %v372_v10  ;;  %v874_v14 = vpop.f32.mrb[3].mxu0 }
 0x2ee   :  { %v446_v15 = vsel %vm131_vm2, %v443_v13, 0.0 }
 0x2ef   :  { %447 = vadd.xlane.f32.xlu1 %v446_v15 }
 0x378   :  { %v240_v16 = vpop.xlane.xlu0 %239 }
 0x379   :  { %v241_v17 = vmul.f32 0.03125, %v240_v16 }
 0x37b   :  { %v242_v18 = vsub.f32 %v235_v5, %v241_v17  ;;  %v808_v17 = vld [vmem:[%s1235_s13] ss:$0 sm:$0xff] }
 0x37c   :  { %v448_v19 = vpop.xlane.xlu1 %447 }
 0x37d   :  { %v449_v20 = vmul.f32 0.03125, %v448_v19  ;;  %v243_v21 = vmul.f32 %v242_v18, %v242_v18 }
 0x37f   :  { %v450_v22 = vsub.f32 %v443_v13, %v449_v20  ;;  %v244_v23 = vsel %vm131_vm2, %v243_v21, 0.0 }
 0x380   :  { %245 = vadd.xlane.f32.xlu0 %v244_v23 }
 0x381   :  { %v451_v24 = vmul.f32 %v450_v22, %v450_v22 }
 0x383   :  { %v452_v25 = vsel %vm131_vm2, %v451_v24, 0.0 }
 0x384   :  { %453 = vadd.xlane.f32.xlu1 %v452_v25 }
 0x40d   :  { %v246_v39 = vpop.xlane.xlu0 %245 }
 0x40e   :  { %v247_v40 = vmul.f32 0.03125, %v246_v39 }
 0x410   :  { %v248_v41 = vadd.f32 1e-05, %v247_v40 }
 0x411   :  { %v454_v42 = vpop.xlane.xlu1 %453 }
 0x412   :  { %962 = vrsqrt.f32 %v248_v41  ;;  %v455_v43 = vmul.f32 0.03125, %v454_v42 }
 0x414   :  { %v456_v44 = vadd.f32 1e-05, %v455_v43 }
 0x416   :  { %964 = vrsqrt.f32 %v456_v44 }
 0x41c   :  { %v963_v48 = vpop.eup %962 }
 0x41d   :  { %v250_v49 = vmul.f32 %v963_v48, %v242_v18 }
 0x41f   :  { %v255_v53 = vmul.f32 %v254_v47, %v250_v49 }
 0x420   :  { %v965_v55 = vpop.eup %964 }
 0x421   :  { %v458_v57 = vmul.f32 %v965_v55, %v450_v22  ;;  %v260_v58 = vadd.f32 %v259_v50, %v255_v53 }
 0x423   :  { %v463_v62 = vmul.f32 %v462_v54, %v458_v57  ;;  %895 = vmatmul.mubr.msk.f32.vlgmr.msra.gmra.mrb[4].mxu0 %vm164_vm3, %v260_v58 }
 0x424   :  { %951 = vmatpush3.bf16.msra.mxu0 %v950_v56  ;;  %916 = vmatprep.mubr.msk.f32.mxu0 %vm967_vm1, %v966_v0 }
 0x425   :  { %952 = vmatprep.subr.bf16.mxu0 %v968_v35  ;;  %v468_v9 = vadd.f32 %v467_v8, %v463_v62 }
 0x427   :  { %884 = vmatmul.mubr.msk.f32.vlgmr.msra.gmra.mrb[4].mxu1 %vm164_vm3, %v468_v9 }
 0x428   :  { %945 = vmatpush3.bf16.msra.mxu1 %v944_v63  ;;  %954 = vmatpush3.bf16.msra.mxu0 %v953_v1 }
 0x429   :  { %946 = vmatprep.subr.bf16.mxu1 %v968_v35  ;;  %905 = vmatprep.mubr.msk.f32.mxu1 %vm967_vm1, %v966_v0 }
 0x42b   :  { %917 = vmatmul.mubr.msk.f32.vlgmr.msra.gmra.mrb[6].mxu0 %vm164_vm3, %v260_v58 }
 0x42c   :  { %948 = vmatpush3.bf16.msra.mxu1 %v947_v4 }
 0x42f   :  { %906 = vmatmul.mubr.msk.f32.vlgmr.msra.gmra.mrb[6].mxu1 %vm164_vm3, %v468_v9 }
 0x4f6   :  { %v619_v5 = vpop.f32.mrb[4].mxu0 }
 0x4f7   :  { %v896_v7 = vpop.f32.mrb[5].mxu0 }
 0x4fa   :  { %v546_v10 = vpop.f32.mrb[4].mxu1 }
 0x4fb   :  { %v620_v12 = vadd.f32 %v619_v5, %v546_v10  ;;  %v885_v13 = vpop.f32.mrb[5].mxu1 }
 0x4fd   :  { %v630_v14 = vadd.f32 %v805_v11, %v620_v12 }
 0x4fe   :  { %v778_v35 = vpop.f32.mrb[6].mxu0 }
 0x4ff   :  { %v631_v15 = vadd.f32 1.0, %v630_v14  ;;  %v918_v16 = vpop.f32.mrb[7].mxu0 }
 0x501   :  { %633 = vst.msk [vmem:[%s1234_s14] sm:$0x3] %vm632_vm4, %v631_v15 }
 0x502   :  { %v708_v0 = vpop.f32.mrb[6].mxu1 }
 0x503   :  { %v779_v18 = vadd.f32 %v778_v35, %v708_v0  ;;  %v907_v19 = vpop.f32.mrb[7].mxu1 }
 0x505   :  { %v789_v20 = vadd.f32 %v808_v17, %v779_v18 }
 0x507   :  { %790 = vst.msk [vmem:[%s1236_s15] sm:$0x3] %vm632_vm4, %v789_v20 }

</bundles_post_ra>
